<compile_context>
chip_gen: v6e
topology: v6e:2x2x1
jax: 0.10.0
libtpu: 0.0.40
codegen_flags: <defaults>
</compile_context>

<pallas_src>
import functools

import jax
import jax.numpy as jnp
from jax.experimental import pallas as pl
from jax.experimental.pallas import tpu as pltpu


def mlp_kernel(x_ref, w1_ref, b1_ref, w2_ref, b2_ref, w3_ref, b3_ref, o_ref,
               *, chunk, n_chunks):
    # Hoist all (tiny) weight loads out of the sub-chunk loop.
    w1 = w1_ref[...]            # (H, 1)
    b1 = b1_ref[...]            # (H, 1)
    w2 = w2_ref[...]            # (H, H)
    b2 = b2_ref[...]            # (H, 1)
    w3 = w3_ref[...]            # (H, 1)
    b3 = b3_ref[0, 0]           # scalar (SMEM)

    def body(c, carry):
        start = pl.multiple_of(c * chunk, chunk)
        x = x_ref[:, pl.ds(start, chunk)]                      # (1, chunk) batch on lanes
        # layer 1 (in_features = 1): outer product on the VPU, no K=1 MXU push
        h1 = jnp.maximum(w1 * x + b1, 0.0)                     # (H, chunk)
        # layer 2: the only real matmul, H x H on the MXU, f32 accumulation
        h2 = jnp.dot(w2, h1, preferred_element_type=jnp.float32)
        h2 = jnp.maximum(h2 + b2, 0.0)                         # (H, chunk)
        # layer 3 (out_features = 1): VPU multiply + XLU sublane reduce over H
        out = jnp.sum(w3 * h2, axis=0, keepdims=True) + b3     # (1, chunk)
        o_ref[:, pl.ds(start, chunk)] = out                    # lane-dense store
        return carry

    jax.lax.fori_loop(0, n_chunks, body, 0, unroll=True)


def _num_tensorcores():
    """2 on dual-TensorCore chips (v7x), 1 otherwise (v5e/v6e). Safe default 1."""
    try:
        kind = jax.devices()[0].device_kind.lower()
    except Exception:
        return 1
    return 2 if "v7" in kind else 1


def red_neuronal_ventas(x, w1, b1, w2, b2, w3, b3, *, max_tn=2048, chunk=512):
    """Forward pass matching PyTorch RedNeuronalVentas.

    x:  (N, 1) float32
    w1: (H, 1), b1: (H,)   -- capa_entrada  (PyTorch nn.Linear (out, in) layout)
    w2: (H, H), b2: (H,)   -- capa_intermedia
    w3: (1, H), b3: (1,)   -- capa_salida
    Returns (N, 1) float32.
    """
    n = x.shape[0]
    h = w1.shape[0]
    num_tc = _num_tensorcores()

    # --- generation-aware grid sizing (review items 1-2) ---------------------
    n128 = pl.cdiv(n, 128) * 128
    if n128 <= chunk:
        steps, tn = 1, n128                       # tiny batch: one step, one chunk
    else:
        steps = max(num_tc, pl.cdiv(n128, max_tn))        # grow grid only past max_tn
        steps = pl.cdiv(steps, num_tc) * num_tc           # even split across TCs
        tn = pl.cdiv(n128, steps * chunk) * chunk         # per-step lanes, chunk-aligned
    n_pad = tn * steps
    sub = min(tn, chunk)                          # in-kernel sub-chunk width
    n_sub = tn // sub

    # --- VMEM budget sanity (review item 5): assert, don't tune --------------
    vmem_bytes = 4 * (
        2 * (h * 1 + h + h * h + h + h)   # double-buffered resident weights/biases
        + 2 * 2 * tn                      # double-buffered (1,tn) x and out tiles
        + 2 * h * sub                     # h1/h2 intermediates for one sub-chunk
    )
    assert vmem_bytes < 16 * 1024 * 1024, vmem_bytes   # far below 32/64 MiB limits

    # batch-on-lanes layout: (N, 1) -> (1, N) is a pure reshape, then pad lanes
    x_t = jnp.pad(x.reshape(1, n).astype(jnp.float32), ((0, 0), (0, n_pad - n)))

    w1c = w1.reshape(h, 1).astype(jnp.float32)        # (H, 1) column
    b1c = b1.reshape(h, 1).astype(jnp.float32)        # (H, 1)
    w2m = w2.astype(jnp.float32)                      # (H_out, H_in): W2 @ h1
    b2c = b2.reshape(h, 1).astype(jnp.float32)        # (H, 1)
    w3c = w3.reshape(1, h).T.astype(jnp.float32)      # (H, 1) column
    b3s = b3.reshape(1, 1).astype(jnp.float32)        # scalar -> SMEM

    cost = pl.CostEstimate(                           # review item 8
        flops=2 * h * h * n_pad + 4 * h * n_pad,
        transcendentals=0,
        bytes_accessed=4 * (2 * n_pad + h * h + 4 * h + 1),
    )

    const = lambda i: (0, 0)                          # weights/biases: grid-resident
    kernel = functools.partial(mlp_kernel, chunk=sub, n_chunks=n_sub)

    out_t = pl.pallas_call(
        kernel,
        out_shape=jax.ShapeDtypeStruct((1, n_pad), jnp.float32),
        grid=(steps,),
        in_specs=[
            pl.BlockSpec((1, tn), lambda i: (0, i)),                 # x tile (lanes = batch)
            pl.BlockSpec((h, 1), const),                             # w1 column
            pl.BlockSpec((h, 1), const),                             # b1
            pl.BlockSpec((h, h), const),                             # W2
            pl.BlockSpec((h, 1), const),                             # b2
            pl.BlockSpec((h, 1), const),                             # w3 column
            pl.BlockSpec(memory_space=pltpu.MemorySpace.SMEM),       # b3 scalar
        ],
        out_specs=pl.BlockSpec((1, tn), lambda i: (0, i)),
        compiler_params=pltpu.CompilerParams(
            dimension_semantics=("parallel",)),                      # v7x: 2 TCs split batch
        cost_estimate=cost,
    )(x_t, w1c, b1c, w2m, b2c, w3c, b3s)

    return out_t[:, :n].reshape(n, 1)


if __name__ == "__main__":
    neuronas_ocultas = 32   # hidden width H
    batch = 1000            # N samples, 1 feature each (padded to 1024 lanes)

    key = jax.random.PRNGKey(0)
    kx, k1, kb1, k2, kb2, k3, kb3 = jax.random.split(key, 7)

    # deterministic synthetic parameters in PyTorch nn.Linear layout (out, in) / (out,)
    w1 = jax.random.normal(k1, (neuronas_ocultas, 1), jnp.float32) * 0.5
    b1 = jax.random.normal(kb1, (neuronas_ocultas,), jnp.float32) * 0.1
    w2 = jax.random.normal(k2, (neuronas_ocultas, neuronas_ocultas), jnp.float32) * 0.2
    b2 = jax.random.normal(kb2, (neuronas_ocultas,), jnp.float32) * 0.1
    w3 = jax.random.normal(k3, (1, neuronas_ocultas), jnp.float32) * 0.3
    b3 = jax.random.normal(kb3, (1,), jnp.float32) * 0.1

    x = jax.random.normal(kx, (batch, 1), jnp.float32)

    out = red_neuronal_ventas(x, w1, b1, w2, b2, w3, b3)
    out = jax.block_until_ready(out)

    # pure-JAX reference of the PyTorch forward pass (high-precision matmuls)
    hp = jax.lax.Precision.HIGHEST
    ref = jnp.maximum(jnp.dot(x, w1.T, precision=hp) + b1, 0.0)
    ref = jnp.maximum(jnp.dot(ref, w2.T, precision=hp) + b2, 0.0)
    ref = jnp.dot(ref, w3.T, precision=hp) + b3

    assert out.shape == (batch, 1)
    assert jnp.allclose(out, ref, atol=5e-4, rtol=5e-4), float(jnp.max(jnp.abs(out - ref)))
    print("KERNEL_OK")
</pallas_src>

<mosaic_0001>
module attributes {stable_mosaic.version = 11 : i64} {
  func.func @mlp_kernel(%arg0: i32, %arg1: memref<1x1024xf32, #tpu.memory_space<vmem>>, %arg2: memref<32x1xf32, #tpu.memory_space<vmem>>, %arg3: memref<32x1xf32, #tpu.memory_space<vmem>>, %arg4: memref<32x32xf32, #tpu.memory_space<vmem>>, %arg5: memref<32x1xf32, #tpu.memory_space<vmem>>, %arg6: memref<32x1xf32, #tpu.memory_space<vmem>>, %arg7: memref<1x1xf32, #tpu.memory_space<smem>>, %arg8: memref<1x1024xf32, #tpu.memory_space<vmem>>) attributes {dimension_semantics = [#tpu.dimension_semantics<parallel>], iteration_bounds = array<i64: 1>, scalar_prefetch = 0 : i64, scratch_operands = 0 : i64, tpu.core_type = #tpu.core_type<tc>, window_params = [{transform_indices = @transform_0, window_bounds = array<i64: 1, 1024>}, {pipeline_mode = #tpu.pipeline_mode<synchronous>, transform_indices = @transform_1, window_bounds = array<i64: 32, 1>}, {pipeline_mode = #tpu.pipeline_mode<synchronous>, transform_indices = @transform_2, window_bounds = array<i64: 32, 1>}, {pipeline_mode = #tpu.pipeline_mode<synchronous>, transform_indices = @transform_3, window_bounds = array<i64: 32, 32>}, {pipeline_mode = #tpu.pipeline_mode<synchronous>, transform_indices = @transform_4, window_bounds = array<i64: 32, 1>}, {pipeline_mode = #tpu.pipeline_mode<synchronous>, transform_indices = @transform_5, window_bounds = array<i64: 32, 1>}, {transform_indices = @transform_6, window_bounds = array<i64: 1, 1>}, {transform_indices = @transform_7, window_bounds = array<i64: 1, 1024>}]} {
    %c0 = arith.constant 0 : index
    %c0_0 = arith.constant 0 : index
    %0 = vector.load %arg2[%c0, %c0_0] : memref<32x1xf32, #tpu.memory_space<vmem>>, vector<32x1xf32>
    %c0_1 = arith.constant 0 : index
    %c0_2 = arith.constant 0 : index
    %1 = vector.load %arg3[%c0_1, %c0_2] : memref<32x1xf32, #tpu.memory_space<vmem>>, vector<32x1xf32>
    %c0_3 = arith.constant 0 : index
    %c0_4 = arith.constant 0 : index
    %2 = vector.load %arg4[%c0_3, %c0_4] : memref<32x32xf32, #tpu.memory_space<vmem>>, vector<32x32xf32>
    %c0_5 = arith.constant 0 : index
    %c0_6 = arith.constant 0 : index
    %3 = vector.load %arg5[%c0_5, %c0_6] : memref<32x1xf32, #tpu.memory_space<vmem>>, vector<32x1xf32>
    %c0_7 = arith.constant 0 : index
    %c0_8 = arith.constant 0 : index
    %4 = vector.load %arg6[%c0_7, %c0_8] : memref<32x1xf32, #tpu.memory_space<vmem>>, vector<32x1xf32>
    %c0_9 = arith.constant 0 : index
    %c0_10 = arith.constant 0 : index
    %5 = memref.load %arg7[%c0_9, %c0_10] : memref<1x1xf32, #tpu.memory_space<smem>>
    %c0_i32 = arith.constant 0 : i32
    %c512_i32 = arith.constant 512 : i32
    %6 = arith.muli %c0_i32, %c512_i32 : i32
    %7 = tpu.assume_multiple %6, 512 : i32
    %c0_11 = arith.constant 0 : index
    %8 = arith.index_cast %7 : i32 to index
    %9 = vector.load %arg1[%c0_11, %8] : memref<1x1024xf32, #tpu.memory_space<vmem>>, vector<1x512xf32>
    %10 = vector.broadcast %0 : vector<32x1xf32> to vector<32x512xf32>
    %11 = vector.broadcast %9 : vector<1x512xf32> to vector<32x512xf32>
    %12 = arith.mulf %10, %11 : vector<32x512xf32>
    %13 = vector.broadcast %1 : vector<32x1xf32> to vector<32x512xf32>
    %14 = arith.addf %12, %13 : vector<32x512xf32>
    %cst = arith.constant 0.000000e+00 : f32
    %15 = vector.broadcast %cst : f32 to vector<32x512xf32>
    %16 = arith.maximumf %14, %15 : vector<32x512xf32>
    %cst_12 = arith.constant dense<0.000000e+00> : vector<32x512xf32>
    %17 = tpu.matmul %2, %16, %cst_12 {dimension_numbers = #tpu.dot_dimension_numbers<[1], [0], [0], [1], [0, 0, 1, 1], [], []>} : vector<32x32xf32>, vector<32x512xf32>, vector<32x512xf32> -> vector<32x512xf32>
    %18 = vector.broadcast %3 : vector<32x1xf32> to vector<32x512xf32>
    %19 = arith.addf %17, %18 : vector<32x512xf32>
    %cst_13 = arith.constant 0.000000e+00 : f32
    %20 = vector.broadcast %cst_13 : f32 to vector<32x512xf32>
    %21 = arith.maximumf %19, %20 : vector<32x512xf32>
    %22 = vector.broadcast %4 : vector<32x1xf32> to vector<32x512xf32>
    %23 = arith.mulf %22, %21 : vector<32x512xf32>
    %cst_14 = arith.constant dense<0.000000e+00> : vector<512xf32>
    %24 = vector.multi_reduction <add>, %23, %cst_14 [0] : vector<32x512xf32> to vector<512xf32>
    %25 = vector.shape_cast %24 : vector<512xf32> to vector<1x512xf32>
    %26 = vector.broadcast %5 : f32 to vector<1x512xf32>
    %27 = arith.addf %25, %26 : vector<1x512xf32>
    %c0_15 = arith.constant 0 : index
    %28 = arith.index_cast %7 : i32 to index
    %29 = vector.load %arg8[%c0_15, %28] : memref<1x1024xf32, #tpu.memory_space<vmem>>, vector<1x512xf32>
    tpu.vector_store %arg8[%c0_15, %28], %27 {strides = array<i32>} : memref<1x1024xf32, #tpu.memory_space<vmem>>, vector<1x512xf32>,
    %c1_i32 = arith.constant 1 : i32
    %c512_i32_16 = arith.constant 512 : i32
    %30 = arith.muli %c1_i32, %c512_i32_16 : i32
    %31 = tpu.assume_multiple %30, 512 : i32
    %c0_17 = arith.constant 0 : index
    %32 = arith.index_cast %31 : i32 to index
    %33 = vector.load %arg1[%c0_17, %32] : memref<1x1024xf32, #tpu.memory_space<vmem>>, vector<1x512xf32>
    %34 = vector.broadcast %0 : vector<32x1xf32> to vector<32x512xf32>
    %35 = vector.broadcast %33 : vector<1x512xf32> to vector<32x512xf32>
    %36 = arith.mulf %34, %35 : vector<32x512xf32>
    %37 = vector.broadcast %1 : vector<32x1xf32> to vector<32x512xf32>
    %38 = arith.addf %36, %37 : vector<32x512xf32>
    %cst_18 = arith.constant 0.000000e+00 : f32
    %39 = vector.broadcast %cst_18 : f32 to vector<32x512xf32>
    %40 = arith.maximumf %38, %39 : vector<32x512xf32>
    %cst_19 = arith.constant dense<0.000000e+00> : vector<32x512xf32>
    %41 = tpu.matmul %2, %40, %cst_19 {dimension_numbers = #tpu.dot_dimension_numbers<[1], [0], [0], [1], [0, 0, 1, 1], [], []>} : vector<32x32xf32>, vector<32x512xf32>, vector<32x512xf32> -> vector<32x512xf32>
    %42 = vector.broadcast %3 : vector<32x1xf32> to vector<32x512xf32>
    %43 = arith.addf %41, %42 : vector<32x512xf32>
    %cst_20 = arith.constant 0.000000e+00 : f32
    %44 = vector.broadcast %cst_20 : f32 to vector<32x512xf32>
    %45 = arith.maximumf %43, %44 : vector<32x512xf32>
    %46 = vector.broadcast %4 : vector<32x1xf32> to vector<32x512xf32>
    %47 = arith.mulf %46, %45 : vector<32x512xf32>
    %cst_21 = arith.constant dense<0.000000e+00> : vector<512xf32>
    %48 = vector.multi_reduction <add>, %47, %cst_21 [0] : vector<32x512xf32> to vector<512xf32>
    %49 = vector.shape_cast %48 : vector<512xf32> to vector<1x512xf32>
    %50 = vector.broadcast %5 : f32 to vector<1x512xf32>
    %51 = arith.addf %49, %50 : vector<1x512xf32>
    %c0_22 = arith.constant 0 : index
    %52 = arith.index_cast %31 : i32 to index
    %53 = vector.load %arg8[%c0_22, %52] : memref<1x1024xf32, #tpu.memory_space<vmem>>, vector<1x512xf32>
    tpu.vector_store %arg8[%c0_22, %52], %51 {strides = array<i32>} : memref<1x1024xf32, #tpu.memory_space<vmem>>, vector<1x512xf32>,
    %c2_i32 = arith.constant 2 : i32
    return
  }
  func.func @transform_0(%arg0: i32) -> (i32, i32) {
    %c0_i32 = arith.constant 0 : i32
    %c0_i32_0 = arith.constant 0 : i32
    return %c0_i32, %arg0 : i32, i32
  }
  func.func @transform_1(%arg0: i32) -> (i32, i32) {
    %c0_i32 = arith.constant 0 : i32
    %c0_i32_0 = arith.constant 0 : i32
    %c0_i32_1 = arith.constant 0 : i32
    return %c0_i32, %c0_i32_0 : i32, i32
  }
  func.func @transform_2(%arg0: i32) -> (i32, i32) {
    %c0_i32 = arith.constant 0 : i32
    %c0_i32_0 = arith.constant 0 : i32
    %c0_i32_1 = arith.constant 0 : i32
    return %c0_i32, %c0_i32_0 : i32, i32
  }
  func.func @transform_3(%arg0: i32) -> (i32, i32) {
    %c0_i32 = arith.constant 0 : i32
    %c0_i32_0 = arith.constant 0 : i32
    %c0_i32_1 = arith.constant 0 : i32
    return %c0_i32, %c0_i32_0 : i32, i32
  }
  func.func @transform_4(%arg0: i32) -> (i32, i32) {
    %c0_i32 = arith.constant 0 : i32
    %c0_i32_0 = arith.constant 0 : i32
    %c0_i32_1 = arith.constant 0 : i32
    return %c0_i32, %c0_i32_0 : i32, i32
  }
  func.func @transform_5(%arg0: i32) -> (i32, i32) {
    %c0_i32 = arith.constant 0 : i32
    %c0_i32_0 = arith.constant 0 : i32
    %c0_i32_1 = arith.constant 0 : i32
    return %c0_i32, %c0_i32_0 : i32, i32
  }
  func.func @transform_6(%arg0: i32) -> (i32, i32) {
    %c0_i32 = arith.constant 0 : i32
    %c0_i32_0 = arith.constant 0 : i32
    %c0_i32_1 = arith.constant 0 : i32
    return %c0_i32, %c0_i32_0 : i32, i32
  }
  func.func @transform_7(%arg0: i32) -> (i32, i32) {
    %c0_i32 = arith.constant 0 : i32
    %c0_i32_0 = arith.constant 0 : i32
    return %c0_i32, %arg0 : i32, i32
  }
}

</mosaic_0001>

<bundles_post_ra>
// kernel: tpu_custom_call.1
= control target key start
LH: loop header
LB: loop body
LE: loop exit
PB: predicated region body
PF: predicated region fallthrough
CT: control target
= control target key end

     0   :  { %v908_v2 = vmov 0   ;;  %s1283_s0 = inlined_call_operand.vmem [shape: f32[1,1024], index: 0, kind: input, shape index: {}]   ;;  %s1284_s1 = inlined_call_operand.vmem [shape: f32[32,1], index: 1, kind: input, shape index: {}]   ;;  %s1285_s2 = inlined_call_operand.vmem [shape: f32[32,1], index: 2, kind: input, shape index: {}]   ;;  %s1286_s3 = inlined_call_operand.vmem [shape: f32[32,32], index: 3, kind: input, shape index: {}]   ;;  %s1287_s4 = inlined_call_operand.vmem [shape: f32[32,1], index: 4, kind: input, shape index: {}]   ;;  %s1288_s5 = inlined_call_operand.vmem [shape: f32[32,1], index: 5, kind: input, shape index: {}]   ;;  %s1289_s6 = inlined_call_operand.<no memory space> [shape: f32[1,1], index: 6, kind: input, shape index: {}]   ;;  %s1290_s7 = inlined_call_operand.hbm [shape: f32[1,1024], index: 7, kind: output, shape index: {}]  }
   0x1   :  { %v35_v0 = vld [vmem:[%s1285_s2 + $0x18] sm:$0xff]  ;;  %885 = vset.pattern.permute.xlu1 %v908_v2  ;;  %884 = vset.pattern.permute.xlu0 %v908_v2  ;;  %v30_v3 = vld [vmem:[%s1284_s1 + $0x10] sm:$0xff]  ;;  %v29_v4 = vld [vmem:[%s1284_s1 + $0x8] sm:$0xff] }
   0x2   :  { %v31_v1 = vld [vmem:[%s1284_s1 + $0x18] sm:$0xff]  ;;  %124 = vperm.xlu1 %885, %v35_v0  }
   0x3   :  { %67 = vperm.xlu0 %884, %v31_v1  }
   0x6   :  { %57 = vperm.xlu1 %885, %v29_v4  }
   0x7   :  { %62 = vperm.xlu0 %884, %v30_v3  }
   0x8   :  { %13 = vsyncpa [#allocation4], 0  ;;  %v34_v5 = vld [vmem:[%s1285_s2 + $0x10] sm:$0xff]  ;;  %v28_v6 = vld [vmem:[%s1284_s1] sm:$0xff]  ;;  %v909_v11 = vmov 0.0   ;;  %v71_v18 = vlaneseq  ;;  %vm179_vm0 = vcmask 261120  }
   0x9   :  { %v33_v7 = vld [vmem:[%s1285_s2 + $0x8] sm:$0xff]  ;;  %v32_v8 = vld [vmem:[%s1285_s2] sm:$0xff]  ;;  %256 = vmatprep.mubr.f32.mxu0 %v909_v11  ;;  %345 = vmatprep.mubr.f32.mxu1 %v909_v11  ;;  %v42_v12 = vld [vmem:[%s1287_s4 + $0x10] sm:$0xff] }
   0xa   :  { %52 = vperm.xlu1 %885, %v28_v6   ;;  %v40_v9 = vld [vmem:[%s1287_s4] sm:$0xff]  ;;  %v41_v10 = vld [vmem:[%s1287_s4 + $0x8] sm:$0xff]  ;;  %v43_v13 = vld [vmem:[%s1287_s4 + $0x18] sm:$0xff]  ;;  %v1003_v19 = vshrl.u32 %v71_v18, 7  ;;  %vm1264_vm1 = vcmp.lt.s32.totalorder %v71_v18, 512 }
   0xb   :  { %119 = vperm.xlu0 %884, %v34_v5   ;;  %v44_v14 = vld [vmem:[%s1288_s5] sm:$0xff]  ;;  %v45_v15 = vld [vmem:[%s1288_s5 + $0x8] sm:$0xff]  ;;  %v46_v16 = vld [vmem:[%s1288_s5 + $0x10] sm:$0xff] }
   0xc   :  { %v47_v17 = vld [vmem:[%s1288_s5 + $0x18] sm:$0xff]  ;;  %v77_v20 = vsub.s32 1, %v1003_v19  ;;  %v85_v21 = vsub.s32 3, %v1003_v19  ;;  %v73_v22 = vsub.s32 0, %v1003_v19  ;;  %v81_v23 = vsub.s32 2, %v1003_v19 }
   0xd   :  { %v49_v24 = vld [vmem:[%s1283_s0] sm:$0xf]  ;;  %v871_v25 = vld [vmem:[%s1283_s0 + $0x4] sm:$0xf] }
   0xe   :  { %109 = vperm.xlu1 %885, %v32_v8   ;;  %v78_v26 = vrot.slane %v49_v24, %v77_v20  ;;  %v86_v27 = vrot.slane %v49_v24, %v85_v21  ;;  %v74_v28 = vrot.slane %v49_v24, %v73_v22  ;;  %v82_v29 = vrot.slane %v49_v24, %v81_v23 }
   0xf   :  { %114 = vperm.xlu0 %884, %v33_v7   ;;  %v1015_v30 = vrot.slane %v871_v25, %v77_v20  ;;  %v1019_v33 = vrot.slane %v871_v25, %v73_v22  ;;  %v1021_v34 = vrot.slane %v871_v25, %v85_v21  ;;  %v1023_v39 = vrot.slane %v871_v25, %v81_v23 }
  0x12   :  { %166 = vperm.xlu1 %885, %v41_v10  }
  0x13   :  { %161 = vperm.xlu0 %884, %v40_v9  }
  0x16   :  { %176 = vperm.xlu1 %885, %v43_v13  }
  0x17   :  { %171 = vperm.xlu0 %884, %v42_v12  }
  0x1a   :  { %393 = vperm.xlu1 %885, %v45_v15  }
  0x1b   :  { %388 = vperm.xlu0 %884, %v44_v14  }
  0x1e   :  { %403 = vperm.xlu1 %885, %v47_v17  }
  0x1f   :  { %398 = vperm.xlu0 %884, %v46_v16  }
  0x7d   :  { %v1017_v31 = vpop.permute.xlu1 %124 }
  0x7e   :  { %v68_v32 = vpop.permute.xlu0 %67 }
  0x7f   :  { %v104_v35 = vmul.f32 %v78_v26, %v68_v32  ;;  %v106_v36 = vmul.f32 %v86_v27, %v68_v32  ;;  %v103_v37 = vmul.f32 %v74_v28, %v68_v32  ;;  %v105_v38 = vmul.f32 %v82_v29, %v68_v32 }
  0x80   :  { %v533_v40 = vmul.f32 %v1015_v30, %v68_v32  ;;  %v535_v47 = vmul.f32 %v1021_v34, %v68_v32  ;;  %v532_v48 = vmul.f32 %v1019_v33, %v68_v32  ;;  %v534_v55 = vmul.f32 %v1023_v39, %v68_v32 }
  0x81   :  { %v140_v41 = vadd.f32 %v1017_v31, %v104_v35  ;;  %v142_v42 = vadd.f32 %v1017_v31, %v106_v36  ;;  %v139_v43 = vadd.f32 %v1017_v31, %v103_v37  ;;  %v141_v44 = vadd.f32 %v1017_v31, %v105_v38  ;;  %v1032_v46 = vpop.permute.xlu1 %57 }
  0x82   :  { %v1030_v45 = vpop.permute.xlu0 %62  ;;  %v1038_v54 = vadd.f32 %v533_v40, %v1017_v31  ;;  %v96_v61 = vmul.f32 %v78_v26, %v1032_v46  ;;  %v1050_v62 = vadd.f32 %v535_v47, %v1017_v31  ;;  %v1053_v63 = vadd.f32 %v532_v48, %v1017_v31 }
  0x83   :  { %v156_v49 = vmax.f32 %v140_v41, 0.0  ;;  %v158_v50 = vmax.f32 %v142_v42, 0.0  ;;  %v155_v51 = vmax.f32 %v139_v43, 0.0  ;;  %v157_v52 = vmax.f32 %v141_v44, 0.0 }
  0x84   :  { %v100_v53 = vmul.f32 %v78_v26, %v1030_v45  ;;  %v102_v56 = vmul.f32 %v86_v27, %v1030_v45  ;;  %v99_v57 = vmul.f32 %v74_v28, %v1030_v45  ;;  %v101_v58 = vmul.f32 %v82_v29, %v1030_v45 }
  0x85   :  { %216 = vmatprep.subr.mxu0 %v156_v49  ;;  %305 = vmatprep.subr.mxu1 %v158_v50  ;;  %v1046_v60 = vpop.permute.xlu1 %52  ;;  %v98_v4 = vmul.f32 %v86_v27, %v1032_v46  ;;  %v95_v5 = vmul.f32 %v74_v28, %v1032_v46  ;;  %v97_v6 = vmul.f32 %v82_v29, %v1032_v46  ;;  %v565_v50 = vmax.f32 %v1038_v54, 0.0 }
  0x86   :  { %217 = vmatpush1.msra.mxu0 %v155_v51  ;;  %306 = vmatpush1.msra.mxu1 %v157_v52  ;;  %v1044_v59 = vpop.permute.xlu0 %119  ;;  %v92_v7 = vmul.f32 %v78_v26, %v1046_v60  ;;  %v94_v15 = vmul.f32 %v86_v27, %v1046_v60  ;;  %v91_v16 = vmul.f32 %v74_v28, %v1046_v60  ;;  %v567_v51 = vmax.f32 %v1050_v62, 0.0 }
  0x87   :  { %v136_v0 = vadd.f32 %v1044_v59, %v100_v53  ;;  %v138_v1 = vadd.f32 %v1044_v59, %v102_v56  ;;  %v135_v2 = vadd.f32 %v1044_v59, %v99_v57  ;;  %v137_v3 = vadd.f32 %v1044_v59, %v101_v58 }
  0x88   :  { %v93_v17 = vmul.f32 %v82_v29, %v1046_v60  ;;  %v529_v20 = vmul.f32 %v1015_v30, %v1030_v45  ;;  %v550_v37 = vadd.f32 %v534_v55, %v1017_v31  ;;  %v531_v38 = vmul.f32 %v1021_v34, %v1030_v45  ;;  %v1089_v31 = vld [vmem:[%s1286_s3] sm:$0xff] }
  0x89   :  { %v152_v8 = vmax.f32 %v136_v0, 0.0  ;;  %v154_v9 = vmax.f32 %v138_v1, 0.0  ;;  %v151_v10 = vmax.f32 %v135_v2, 0.0  ;;  %v153_v12 = vmax.f32 %v137_v3, 0.0  ;;  %v1065_v14 = vpop.permute.xlu1 %109 }
  0x8a   :  { %v1063_v13 = vpop.permute.xlu0 %114  ;;  %v128_v25 = vadd.f32 %v1065_v14, %v92_v7  ;;  %v130_v26 = vadd.f32 %v1065_v14, %v94_v15  ;;  %v127_v32 = vadd.f32 %v1065_v14, %v91_v16  ;;  %v129_v36 = vadd.f32 %v1065_v14, %v93_v17  ;;  %v39_v17 = vld [vmem:[%s1286_s3 + $0x18] sm:$0xff] }
  0x8b   :  { %218 = vmatprep.subr.mxu0 %v152_v8  ;;  %307 = vmatprep.subr.mxu1 %v154_v9  ;;  %v132_v21 = vadd.f32 %v1063_v13, %v96_v61  ;;  %v134_v22 = vadd.f32 %v1063_v13, %v98_v4  ;;  %v131_v23 = vadd.f32 %v1063_v13, %v95_v5  ;;  %v564_v55 = vmax.f32 %v1053_v63, 0.0 }
  0x8c   :  { %219 = vmatpush1.msra.mxu0 %v151_v10  ;;  %308 = vmatpush1.msra.mxu1 %v153_v12  ;;  %v133_v24 = vadd.f32 %v1063_v13, %v97_v6  ;;  %v144_v40 = vmax.f32 %v128_v25, 0.0  ;;  %v146_v41 = vmax.f32 %v130_v26, 0.0  ;;  %v545_v42 = vadd.f32 %v529_v20, %v1044_v59 }
  0x8d   :  { %v148_v27 = vmax.f32 %v132_v21, 0.0  ;;  %v150_v28 = vmax.f32 %v134_v22, 0.0  ;;  %v147_v29 = vmax.f32 %v131_v23, 0.0  ;;  %v528_v43 = vmul.f32 %v1019_v33, %v1030_v45  ;;  %v1168_v21 = vpop.permute.xlu1 %166 }
  0x8e   :  { %v149_v35 = vmax.f32 %v133_v24, 0.0  ;;  %v143_v44 = vmax.f32 %v127_v32, 0.0  ;;  %v145_v47 = vmax.f32 %v129_v36, 0.0  ;;  %v547_v48 = vadd.f32 %v531_v38, %v1044_v59  ;;  %v1166_v20 = vpop.permute.xlu0 %161 }
  0x8f   :  { %220 = vmatprep.subr.mxu0 %v148_v27  ;;  %309 = vmatprep.subr.mxu1 %v150_v28  ;;  %v530_v49 = vmul.f32 %v1023_v39, %v1030_v45  ;;  %v544_v52 = vadd.f32 %v528_v43, %v1044_v59  ;;  %v525_v53 = vmul.f32 %v1015_v30, %v1032_v46  ;;  %v566_v56 = vmax.f32 %v550_v37, 0.0 }
  0x90   :  { %221 = vmatpush1.msra.mxu0 %v147_v29  ;;  %310 = vmatpush1.msra.mxu1 %v149_v35  ;;  %v527_v45 = vmul.f32 %v1021_v34, %v1032_v46  ;;  %v561_v54 = vmax.f32 %v545_v42, 0.0  ;;  %v524_v61 = vmul.f32 %v1019_v33, %v1032_v46  ;;  %v526_v62 = vmul.f32 %v1023_v39, %v1032_v46 }
  0x91   :  { %222 = vmatprep.subr.mxu0 %v144_v40  ;;  %311 = vmatprep.subr.mxu1 %v146_v41  ;;  %v546_v57 = vadd.f32 %v530_v49, %v1044_v59  ;;  %v541_v58 = vadd.f32 %v525_v53, %v1063_v13  ;;  %v563_v59 = vmax.f32 %v547_v48, 0.0  ;;  %v521_v0 = vmul.f32 %v1015_v30, %v1046_v60  ;;  %v37_v30 = vld [vmem:[%s1286_s3 + $0x8] sm:$0xff]  ;;  %v1174_v29 = vpop.permute.xlu1 %176 }
  0x92   :  { %223 = vmatpush1.msra.mxu0 %v143_v44  ;;  %312 = vmatpush1.msra.mxu1 %v145_v47  ;;  %v543_v63 = vadd.f32 %v527_v45, %v1063_v13  ;;  %v523_v1 = vmul.f32 %v1021_v34, %v1046_v60  ;;  %v560_v2 = vmax.f32 %v544_v52, 0.0  ;;  %v540_v3 = vadd.f32 %v524_v61, %v1063_v13  ;;  %v1172_v28 = vpop.permute.xlu0 %171 }
  0x93   :  { %863 = vmatmul.mubr.msk.f32.vlgmr.msra.gmra.mxu0 %vm179_vm0, %v1089_v31  ;;  %867 = vmatmul.mubr.msk.f32.vlgmr.msra.gmra.mxu1 %vm179_vm0, %v1089_v31  ;;  %v542_v4 = vadd.f32 %v526_v62, %v1063_v13  ;;  %v520_v46 = vmul.f32 %v1019_v33, %v1046_v60  ;;  %v562_v5 = vmax.f32 %v546_v57, 0.0  ;;  %v537_v6 = vadd.f32 %v521_v0, %v1065_v14 }
  0x94   :  { %592 = vmatprep.subr.mxu0 %v565_v50  ;;  %681 = vmatprep.subr.mxu1 %v567_v51  ;;  %v539_v34 = vadd.f32 %v523_v1, %v1065_v14  ;;  %v522_v7 = vmul.f32 %v1023_v39, %v1046_v60  ;;  %v557_v33 = vmax.f32 %v541_v58, 0.0  ;;  %v559_v8 = vmax.f32 %v543_v63, 0.0 }
  0x95   :  { %593 = vmatpush1.msra.mxu0 %v564_v55  ;;  %682 = vmatpush1.msra.mxu1 %v566_v56  ;;  %v536_v9 = vadd.f32 %v520_v46, %v1065_v14  ;;  %v556_v12 = vmax.f32 %v540_v3, 0.0  ;;  %v558_v13 = vmax.f32 %v542_v4, 0.0  ;;  %v553_v39 = vmax.f32 %v537_v6, 0.0  ;;  %v1186_v52 = vpop.permute.xlu1 %393 }
  0x96   :  { %594 = vmatprep.subr.mxu0 %v561_v54  ;;  %683 = vmatprep.subr.mxu1 %v563_v59  ;;  %v538_v10 = vadd.f32 %v522_v7, %v1065_v14  ;;  %v555_v60 = vmax.f32 %v539_v34, 0.0  ;;  %v38_v14 = vld [vmem:[%s1286_s3 + $0x10] sm:$0xff]  ;;  %v910_v44 = vmov 1966171168   ;;  %v1184_v51 = vpop.permute.xlu0 %388 }
  0x97   :  { %262 = vmatprep.mubr.f32.mxu0 %v909_v11  ;;  %351 = vmatprep.mubr.f32.mxu1 %v909_v11  ;;  %v552_v15 = vmax.f32 %v536_v9, 0.0  ;;  %v1180_v47 = vunpack.c.l.s4 %v910_v44 }
  0x98   :  { %595 = vmatpush1.msra.mxu0 %v560_v2  ;;  %684 = vmatpush1.msra.mxu1 %v562_v5  ;;  %v554_v16 = vmax.f32 %v538_v10, 0.0 }
  0x99   :  { %864 = vmatmul.mubr.msk.f32.gmra.mxu0 %vm179_vm0, %v37_v30  ;;  %868 = vmatmul.mubr.msk.f32.gmra.mxu1 %vm179_vm0, %v37_v30  ;;  %v471_v63 = vunpack.c.0.s8 %v1180_v47 }
  0x9a   :  { %596 = vmatprep.subr.mxu0 %v557_v33  ;;  %685 = vmatprep.subr.mxu1 %v559_v8 }
  0x9b   :  { %597 = vmatpush1.msra.mxu0 %v556_v12  ;;  %686 = vmatpush1.msra.mxu1 %v558_v13  ;;  %v1201_v13 = vpop.permute.xlu0 %398 }
  0x9c   :  { %598 = vmatprep.subr.mxu0 %v553_v39  ;;  %687 = vmatprep.subr.mxu1 %v555_v60 }
  0x9d   :  { %268 = vmatprep.mubr.f32.mxu0 %v909_v11  ;;  %357 = vmatprep.mubr.f32.mxu1 %v909_v11 }
  0x9e   :  { %599 = vmatpush1.msra.mxu0 %v552_v15  ;;  %688 = vmatpush1.msra.mxu1 %v554_v16 }
  0x9f   :  { %865 = vmatmul.mubr.msk.f32.gmra.mxu0 %vm179_vm0, %v38_v14  ;;  %869 = vmatmul.mubr.msk.f32.gmra.mxu1 %vm179_vm0, %v38_v14 }
  0xa0   :  { %274 = vmatprep.mubr.f32.mxu0 %v909_v11  ;;  %363 = vmatprep.mubr.f32.mxu1 %v909_v11 }
  0xa3   :  { %866 = vmatmul.mubr.msk.f32.gmra.mxu0 %vm179_vm0, %v39_v17  ;;  %870 = vmatmul.mubr.msk.f32.gmra.mxu1 %vm179_vm0, %v39_v17 }
  0xa4   :  { %632 = vmatprep.mubr.f32.mxu0 %v909_v11  ;;  %721 = vmatprep.mubr.f32.mxu1 %v909_v11 }
  0xa7   :  { %872 = vmatmul.mubr.msk.f32.vlgmr.msra.gmra.mxu0 %vm179_vm0, %v1089_v31  ;;  %876 = vmatmul.mubr.msk.f32.vlgmr.msra.gmra.mxu1 %vm179_vm0, %v1089_v31 }
  0xa8   :  { %638 = vmatprep.mubr.f32.mxu0 %v909_v11  ;;  %727 = vmatprep.mubr.f32.mxu1 %v909_v11 }
  0xab   :  { %873 = vmatmul.mubr.msk.f32.gmra.mxu0 %vm179_vm0, %v37_v30  ;;  %877 = vmatmul.mubr.msk.f32.gmra.mxu1 %vm179_vm0, %v37_v30 }
  0xac   :  { %644 = vmatprep.mubr.f32.mxu0 %v909_v11  ;;  %733 = vmatprep.mubr.f32.mxu1 %v909_v11 }
  0xaf   :  { %874 = vmatmul.mubr.msk.f32.gmra.mxu0 %vm179_vm0, %v38_v14  ;;  %878 = vmatmul.mubr.msk.f32.gmra.mxu1 %vm179_vm0, %v38_v14 }
  0xb0   :  { %650 = vmatprep.mubr.f32.mxu0 %v909_v11  ;;  %739 = vmatprep.mubr.f32.mxu1 %v909_v11 }
  0xb3   :  { %875 = vmatmul.mubr.msk.f32.gmra.mxu0 %vm179_vm0, %v39_v17  ;;  %879 = vmatmul.mubr.msk.f32.gmra.mxu1 %vm179_vm0, %v39_v17 }
 0x153   :  { %v258_v22 = vpop.f32.mrf.mxu0  ;;  %v347_v23 = vpop.f32.mrf.mxu1 }
 0x154   :  { %v259_v26 = vadd.f32 %v258_v22, %v1166_v20  ;;  %v348_v27 = vadd.f32 %v347_v23, %v1166_v20 }
 0x155   :  { %v260_v24 = vpop.f32.mrf.mxu0  ;;  %v349_v25 = vpop.f32.mrf.mxu1 }
 0x156   :  { %v261_v35 = vadd.f32 %v260_v24, %v1166_v20  ;;  %v350_v36 = vadd.f32 %v349_v25, %v1166_v20  ;;  %v370_v40 = vmax.f32 %v259_v26, 0.0  ;;  %v372_v41 = vmax.f32 %v348_v27, 0.0  ;;  %v1207_v26 = vpop.permute.xlu1 %403 }
 0x158   :  { %v371_v53 = vmax.f32 %v261_v35, 0.0  ;;  %v373_v55 = vmax.f32 %v350_v36, 0.0  ;;  %v406_v62 = vmul.f32 %v1184_v51, %v370_v40  ;;  %v408_v59 = vmul.f32 %v1184_v51, %v372_v41 }
 0x159   :  { %v264_v11 = vpop.f32.mrf.mxu0  ;;  %v353_v32 = vpop.f32.mrf.mxu1 }
 0x15a   :  { %v265_v37 = vadd.f32 %v264_v11, %v1168_v21  ;;  %v354_v38 = vadd.f32 %v353_v32, %v1168_v21  ;;  %v407_v5 = vmul.f32 %v1184_v51, %v371_v53  ;;  %v409_v30 = vmul.f32 %v1184_v51, %v373_v55 }
 0x15b   :  { %v266_v42 = vpop.f32.mrf.mxu0  ;;  %v355_v43 = vpop.f32.mrf.mxu1 }
 0x15c   :  { %v374_v31 = vmax.f32 %v265_v37, 0.0  ;;  %v376_v48 = vmax.f32 %v354_v38, 0.0  ;;  %v267_v49 = vadd.f32 %v266_v42, %v1168_v21  ;;  %v356_v50 = vadd.f32 %v355_v43, %v1168_v21 }
 0x15e   :  { %v375_v56 = vmax.f32 %v267_v49, 0.0  ;;  %v377_v57 = vmax.f32 %v356_v50, 0.0  ;;  %v410_v45 = vmul.f32 %v1186_v52, %v374_v31  ;;  %v412_v54 = vmul.f32 %v1186_v52, %v376_v48 }
 0x15f   :  { %v270_v58 = vpop.f32.mrf.mxu0  ;;  %v359_v61 = vpop.f32.mrf.mxu1 }
 0x160   :  { %v411_v0 = vmul.f32 %v1186_v52, %v375_v56  ;;  %v413_v1 = vmul.f32 %v1186_v52, %v377_v57  ;;  %v271_v2 = vadd.f32 %v270_v58, %v1172_v28  ;;  %v360_v3 = vadd.f32 %v359_v61, %v1172_v28 }
 0x161   :  { %v272_v4 = vpop.f32.mrf.mxu0  ;;  %v361_v46 = vpop.f32.mrf.mxu1  ;;  %v422_v7 = vadd.f32 %v410_v45, %v406_v62  ;;  %v440_v33 = vadd.f32 %v412_v54, %v408_v59 }
 0x162   :  { %v273_v6 = vadd.f32 %v272_v4, %v1172_v28  ;;  %v362_v34 = vadd.f32 %v361_v46, %v1172_v28  ;;  %v378_v8 = vmax.f32 %v271_v2, 0.0  ;;  %v380_v9 = vmax.f32 %v360_v3, 0.0 }
 0x163   :  { %v276_v10 = vpop.f32.mrf.mxu0  ;;  %v365_v12 = vpop.f32.mrf.mxu1  ;;  %v431_v14 = vadd.f32 %v411_v0, %v407_v5  ;;  %v449_v17 = vadd.f32 %v413_v1, %v409_v30  ;;  %v1224_v4 = vstv %s1289_s6  ;;  %v1227_v5 = vsub.s32 %v471_v63, %v1003_v19  ;;  %s911_s6 = smov [#allocation3]  }
 0x164   :  { %v379_v39 = vmax.f32 %v273_v6, 0.0  ;;  %v381_v60 = vmax.f32 %v362_v34, 0.0  ;;  %v277_v15 = vadd.f32 %v276_v10, %v1174_v29  ;;  %v366_v16 = vadd.f32 %v365_v12, %v1174_v29  ;;  %s855_s18 = sshll.u32 %s911_s6, 4  ;;  %s856_s18 = int_to_ptr.vmem [resolvable:$true] %s855_s18 }
 0x165   :  { %v414_v22 = vmul.f32 %v1201_v13, %v378_v8  ;;  %v416_v23 = vmul.f32 %v1201_v13, %v380_v9  ;;  %v278_v24 = vpop.f32.mrf.mxu0  ;;  %v367_v25 = vpop.f32.mrf.mxu1  ;;  %s886_s19 = scalar_lea.vmem %s856_s18, 128  ;;  %p891_p1 = scmp.lt.s32.totalorder %s856_s18, %s856_s18 }
 0x166   :  { %v415_v27 = vmul.f32 %v1201_v13, %v379_v39  ;;  %v417_v11 = vmul.f32 %v1201_v13, %v381_v60  ;;  %v382_v32 = vmax.f32 %v277_v15, 0.0  ;;  %v384_v35 = vmax.f32 %v366_v16, 0.0  ;;  %p887_p0 = scmp.ne.s32.totalorder %s856_s18, %s886_s19  ;;  %p892_p2 = scmp.lt.s32.totalorder %s886_s19, %s886_s19 }
 0x167   :  { %v423_v36 = vadd.f32 %v422_v7, %v414_v22  ;;  %v441_v37 = vadd.f32 %v440_v33, %v416_v23  ;;  %v279_v38 = vadd.f32 %v278_v24, %v1174_v29  ;;  %v368_v40 = vadd.f32 %v367_v25, %v1174_v29  ;;  %v634_v41 = vpop.f32.mrf.mxu0  ;;  %v723_v42 = vpop.f32.mrf.mxu1 }
 0x168   :  { %v432_v43 = vadd.f32 %v431_v14, %v415_v27  ;;  %v450_v44 = vadd.f32 %v449_v17, %v417_v11  ;;  %v418_v47 = vmul.f32 %v1207_v26, %v382_v32  ;;  %v420_v31 = vmul.f32 %v1207_v26, %v384_v35  ;;  %p893_p3 = por %p892_p2, %p891_p1 }
 0x169   :  { %v383_v48 = vmax.f32 %v279_v38, 0.0  ;;  %v385_v49 = vmax.f32 %v368_v40, 0.0  ;;  %v635_v50 = vadd.f32 %v634_v41, %v1166_v20  ;;  %v724_v53 = vadd.f32 %v723_v42, %v1166_v20  ;;  %v636_v55 = vpop.f32.mrf.mxu0  ;;  %v725_v56 = vpop.f32.mrf.mxu1 }
 0x16a   :  { %v424_v57 = vadd.f32 %v423_v36, %v418_v47  ;;  %v442_v45 = vadd.f32 %v441_v37, %v420_v31  ;;  %v637_v54 = vadd.f32 %v636_v55, %v1166_v20  ;;  %v726_v58 = vadd.f32 %v725_v56, %v1166_v20  ;;  %p894_p4 = pnand %p893_p3, %p887_p0 }
 0x16b   :  { %v419_v61 = vmul.f32 %v1207_v26, %v383_v48  ;;  %v421_v62 = vmul.f32 %v1207_v26, %v385_v49  ;;  %v746_v59 = vmax.f32 %v635_v50, 0.0  ;;  %v748_v0 = vmax.f32 %v724_v53, 0.0  ;;  %v640_v1 = vpop.f32.mrf.mxu0  ;;  %v729_v2 = vpop.f32.mrf.mxu1 }
 0x16c   :  { %v425_v3 = vrot.slane %v424_v57, 4  ;;  %v443_v46 = vrot.slane %v442_v45, 4  ;;  %v747_v6 = vmax.f32 %v637_v54, 0.0  ;;  %v749_v34 = vmax.f32 %v726_v58, 0.0 }
 0x16d   :  { %v433_v30 = vadd.f32 %v432_v43, %v419_v61  ;;  %v451_v20 = vadd.f32 %v450_v44, %v421_v62  ;;  %v642_v7 = vpop.f32.mrf.mxu0  ;;  %v731_v33 = vpop.f32.mrf.mxu1  ;;  %v762_v10 = vmul.f32 %v746_v59, %v1184_v51  ;;  %v764_v12 = vmul.f32 %v748_v0, %v1184_v51 }
 0x16e   :  { %v426_v8 = vadd.f32 %v425_v3, %v424_v57  ;;  %v444_v9 = vadd.f32 %v443_v46, %v442_v45  ;;  %v641_v15 = vadd.f32 %v640_v1, %v1168_v21  ;;  %v730_v16 = vadd.f32 %v729_v2, %v1168_v21 }
 0x16f   :  { %v434_v39 = vrot.slane %v433_v30, 4  ;;  %v452_v60 = vrot.slane %v451_v20, 4  ;;  %v646_v19 = vpop.f32.mrf.mxu0  ;;  %v735_v63 = vpop.f32.mrf.mxu1  ;;  %v643_v22 = vadd.f32 %v642_v7, %v1168_v21  ;;  %v732_v23 = vadd.f32 %v731_v33, %v1168_v21 }
 0x170   :  { %v427_v14 = vrot.slane %v426_v8, 2  ;;  %v445_v17 = vrot.slane %v444_v9, 2  ;;  %v750_v27 = vmax.f32 %v641_v15, 0.0  ;;  %v752_v11 = vmax.f32 %v730_v16, 0.0 }
 0x171   :  { %v435_v24 = vadd.f32 %v434_v39, %v433_v30  ;;  %v453_v25 = vadd.f32 %v452_v60, %v451_v20  ;;  %v751_v36 = vmax.f32 %v643_v22, 0.0  ;;  %v753_v37 = vmax.f32 %v732_v23, 0.0  ;;  %v648_v38 = vpop.f32.mrf.mxu0  ;;  %v737_v40 = vpop.f32.mrf.mxu1 }
 0x172   :  { %v428_v32 = vadd.f32 %v427_v14, %v426_v8  ;;  %v446_v35 = vadd.f32 %v445_v17, %v444_v9  ;;  %v766_v43 = vmul.f32 %v750_v27, %v1186_v52  ;;  %v768_v44 = vmul.f32 %v752_v11, %v1186_v52 }
 0x173   :  { %v436_v41 = vrot.slane %v435_v24, 2  ;;  %v454_v42 = vrot.slane %v453_v25, 2  ;;  %v767_v21 = vmul.f32 %v751_v36, %v1186_v52  ;;  %v769_v48 = vmul.f32 %v753_v37, %v1186_v52  ;;  %v652_v58 = vpop.f32.mrf.mxu0  ;;  %v741_v61 = vpop.f32.mrf.mxu1 }
 0x174   :  { %v429_v47 = vrot.slane %v428_v32, 1  ;;  %v447_v31 = vrot.slane %v446_v35, 1  ;;  %v763_v53 = vmul.f32 %v747_v6, %v1184_v51  ;;  %v765_v55 = vmul.f32 %v749_v34, %v1184_v51 }
 0x175   :  { %v437_v49 = vadd.f32 %v436_v41, %v435_v24  ;;  %v455_v50 = vadd.f32 %v454_v42, %v453_v25  ;;  %v778_v45 = vadd.f32 %v766_v43, %v762_v10  ;;  %v796_v54 = vadd.f32 %v768_v44, %v764_v12  ;;  %v654_v9 = vpop.f32.mrf.mxu0  ;;  %v743_v10 = vpop.f32.mrf.mxu1 }
 0x176   :  { %v430_v56 = vadd.f32 %v429_v47, %v428_v32  ;;  %v448_v57 = vadd.f32 %v447_v31, %v446_v35  ;;  %v647_v0 = vadd.f32 %v646_v19, %v1172_v28  ;;  %v736_v1 = vadd.f32 %v735_v63, %v1172_v28 }
 0x177   :  { %v438_v62 = vrot.slane %v437_v49, 1  ;;  %v456_v59 = vrot.slane %v455_v50, 1  ;;  %v787_v2 = vadd.f32 %v767_v21, %v763_v53  ;;  %v805_v52 = vadd.f32 %v769_v48, %v765_v55 }
 0x178   :  { %v649_v3 = vadd.f32 %v648_v38, %v1172_v28  ;;  %v738_v46 = vadd.f32 %v737_v40, %v1172_v28  ;;  %v754_v20 = vmax.f32 %v647_v0, 0.0  ;;  %v756_v6 = vmax.f32 %v736_v1, 0.0 }
 0x179   :  { %v439_v30 = vadd.f32 %v438_v62, %v437_v49  ;;  %v457_v51 = vadd.f32 %v456_v59, %v455_v50  ;;  %v653_v33 = vadd.f32 %v652_v58, %v1174_v29  ;;  %v742_v8 = vadd.f32 %v741_v61, %v1174_v29 }
 0x17a   :  { %v755_v34 = vmax.f32 %v649_v3, 0.0  ;;  %v757_v7 = vmax.f32 %v738_v46, 0.0  ;;  %v770_v60 = vmul.f32 %v754_v20, %v1201_v13  ;;  %v772_v28 = vmul.f32 %v756_v6, %v1201_v13 }
 0x17b   :  { %v460_v12 = vadd.f32 %v1224_v4, %v439_v30  ;;  %v462_v39 = vadd.f32 %v1224_v4, %v457_v51  ;;  %v758_v19 = vmax.f32 %v653_v33, 0.0  ;;  %v760_v63 = vmax.f32 %v742_v8, 0.0 }
 0x17c   :  { %v771_v15 = vmul.f32 %v755_v34, %v1201_v13  ;;  %v773_v16 = vmul.f32 %v757_v7, %v1201_v13  ;;  %v459_v14 = vadd.f32 %v1224_v4, %v430_v56  ;;  %v461_v17 = vadd.f32 %v1224_v4, %v448_v57 }
 0x17d   :  { %v655_v22 = vadd.f32 %v654_v9, %v1174_v29  ;;  %v744_v23 = vadd.f32 %v743_v10, %v1174_v29  ;;  %v779_v24 = vadd.f32 %v778_v45, %v770_v60  ;;  %v797_v25 = vadd.f32 %v796_v54, %v772_v28 }
 0x17e   :  { %v774_v27 = vmul.f32 %v758_v19, %v1207_v26  ;;  %v776_v11 = vmul.f32 %v760_v63, %v1207_v26  ;;  %v467_v36 = vcombine.low %v459_v14, %v460_v12  ;;  %v468_v13 = vcombine.low %v461_v17, %v462_v39 }
 0x17f   :  { %v759_v32 = vmax.f32 %v655_v22, 0.0  ;;  %v761_v35 = vmax.f32 %v744_v23, 0.0  ;;  %v788_v37 = vadd.f32 %v787_v2, %v771_v15  ;;  %v806_v38 = vadd.f32 %v805_v52, %v773_v16 }
 0x180   :  { %v780_v40 = vadd.f32 %v779_v24, %v774_v27  ;;  %v798_v41 = vadd.f32 %v797_v25, %v776_v11  ;;  %v475_v29 = vrot.slane %v467_v36, %v1227_v5  ;;  %v482_v44 = vrot.slane %v468_v13, %v1227_v5 }
 0x181   :  { %v775_v42 = vmul.f32 %v759_v32, %v1207_v26  ;;  %v777_v43 = vmul.f32 %v761_v35, %v1207_v26 }
 0x182   :  { %v781_v47 = vrot.slane %v780_v40, 4  ;;  %v799_v31 = vrot.slane %v798_v41, 4  ;;  %v483_v49 = vcombine.low %v475_v29, %v482_v44 }
 0x183   :  { %v789_v21 = vadd.f32 %v788_v37, %v775_v42  ;;  %v807_v48 = vadd.f32 %v806_v38, %v777_v43 }
 0x184   :  { %v782_v50 = vadd.f32 %v781_v47, %v780_v40  ;;  %v800_v53 = vadd.f32 %v799_v31, %v798_v41  ;;  %v490_v26 = vrot.slane %v483_v49, %v1227_v5 }
 0x185   :  { %v790_v56 = vrot.slane %v789_v21, 4  ;;  %v808_v57 = vrot.slane %v807_v48, 4 }
 0x186   :  { %v783_v45 = vrot.slane %v782_v50, 2  ;;  %v801_v54 = vrot.slane %v800_v53, 2  ;;  %496 = vst.msk [vmem:[#allocation3] sm:$0xf] %vm1264_vm1, %v490_v26 }
 0x187   :  { %v791_v58 = vadd.f32 %v790_v56, %v789_v21  ;;  %v809_v61 = vadd.f32 %v808_v57, %v807_v48 }
 0x188   :  { %v784_v62 = vadd.f32 %v783_v45, %v782_v50  ;;  %v802_v59 = vadd.f32 %v801_v54, %v800_v53 }
 0x189   :  { %v792_v0 = vrot.slane %v791_v58, 2  ;;  %v810_v1 = vrot.slane %v809_v61, 2 }
 0x18a   :  { %v785_v2 = vrot.slane %v784_v62, 1  ;;  %v803_v18 = vrot.slane %v802_v59, 1 }
 0x18b   :  { %v793_v52 = vadd.f32 %v792_v0, %v791_v58  ;;  %v811_v3 = vadd.f32 %v810_v1, %v809_v61 }
 0x18c   :  { %v786_v46 = vadd.f32 %v785_v2, %v784_v62  ;;  %v804_v30 = vadd.f32 %v803_v18, %v802_v59 }
 0x18d   :  { %v794_v51 = vrot.slane %v793_v52, 1  ;;  %v812_v20 = vrot.slane %v811_v3, 1 }
 0x18e   :  { %v814_v7 = vadd.f32 %v786_v46, %v1224_v4  ;;  %v816_v33 = vadd.f32 %v804_v30, %v1224_v4 }
 0x18f   :  { %v795_v6 = vadd.f32 %v794_v51, %v793_v52  ;;  %v813_v34 = vadd.f32 %v812_v20, %v811_v3 }
 0x191   :  { %v815_v8 = vadd.f32 %v795_v6, %v1224_v4  ;;  %v817_v9 = vadd.f32 %v813_v34, %v1224_v4 }
 0x193   :  { %v822_v10 = vcombine.low %v814_v7, %v815_v8  ;;  %v823_v12 = vcombine.low %v816_v33, %v817_v9 }
 0x195   :  { %v830_v39 = vrot.slane %v822_v10, %v1227_v5  ;;  %v837_v60 = vrot.slane %v823_v12, %v1227_v5 }
 0x197   :  { %v838_v28 = vcombine.low %v830_v39, %v837_v60 }
 0x199   :  { %v845_v15 = vrot.slane %v838_v28, %v1227_v5 }
 0x19b   :  { %848 = vst.msk [vmem:[#allocation3 + $0x4] sm:$0xf] %vm1264_vm1, %v845_v15 }
 0x19c   :  { %897 = shalt.err (!%p894_p4)
}
 0x19d   :  { %858 = dma.vmem_to_hbm [thread:$0]  %s856_s18, 128, %s1290_s7, [#allocation4]  }
 0x19e   :  { %906 = dma.done.wait [#allocation4], 128  }
 0x19f   :  { %907 = vsyncadd [#allocation4], 4294967168 }
 0x1a0   :  { %862 = vsyncpa [#allocation4], 1 }

</bundles_post_ra>
